<compile_context>
chip_gen: v6e
topology: v6e:2x2x1
jax: 0.10.0
libtpu: 0.0.40
codegen_flags: <defaults>
</compile_context>

<pallas_src>
import math
import functools

import jax
import jax.numpy as jnp
from jax.experimental import pallas as pl
from jax.experimental.pallas import tpu as pltpu


# ----------------------------------------------------------------------------
# Parameter setup (same math as the PyTorch __init__).
# ----------------------------------------------------------------------------
def _make_pe(max_len: int, d_model: int) -> jnp.ndarray:
    position = jnp.arange(0, max_len, dtype=jnp.float32)[:, None]            # [L, 1]
    div_term = jnp.exp(
        jnp.arange(0, d_model, 2, dtype=jnp.float32) * (-math.log(10000.0) / d_model)
    )                                                                         # [D/2]
    pe = jnp.zeros((max_len, d_model), dtype=jnp.float32)
    pe = pe.at[:, 0::2].set(jnp.sin(position * div_term))
    pe = pe.at[:, 1::2].set(jnp.cos(position * div_term))
    return pe                                                                 # [L, D]


# ----------------------------------------------------------------------------
# Tiling helpers.
# ----------------------------------------------------------------------------
def _sublane_quantum(dtype) -> int:
    """Sublane packing quantum: 8 for 4-byte, 16 for 2-byte, 32 for 1-byte."""
    return max(8, 32 // jnp.dtype(dtype).itemsize)


def _pick_tile_rows(S: int, row_bytes: int, quantum: int,
                    target_bytes: int = 8 << 20) -> int:
    """Sequence-tile rows: ~target_bytes per x block, multiple of `quantum`,
    and at least 2 grid steps whenever S permits (keeps both v7x TCs busy)."""
    if S <= quantum:
        return S                      # full-extent block is always layout-legal
    t = max(quantum, (target_bytes // max(row_bytes, 1)) // quantum * quantum)
    if S >= 2 * quantum:              # guarantee >= 2 (roughly balanced) steps
        half = max(quantum, (S // 2) // quantum * quantum)
        t = min(t, half)
    if t >= S:
        return S
    return t


# ----------------------------------------------------------------------------
# Kernels. x block: [tS, B*D] (lane-dense), pe block: [tS, D] (f32).
# ----------------------------------------------------------------------------
def _add_pe_kernel(x_ref, pe_ref, o_ref, *, batch: int, d_model: int, sliced: bool):
    pe_blk = pe_ref[...]                                           # f32 [tS, D]
    if sliced and batch > 1:
        # D is 128-lane aligned: B static-sliced adds, no [tS, B*D] pe temporary.
        for b in range(batch):
            sl = slice(b * d_model, (b + 1) * d_model)
            o_ref[:, sl] = (x_ref[:, sl].astype(jnp.float32) + pe_blk).astype(o_ref.dtype)
    else:
        pe_t = pe_blk if batch == 1 else jnp.concatenate([pe_blk] * batch, axis=-1)
        o_ref[...] = (x_ref[...].astype(jnp.float32) + pe_t).astype(o_ref.dtype)


def _add_pe_dropout_kernel(seed_ref, x_ref, pe_ref, o_ref, *,
                           batch: int, d_model: int, p: float, sliced: bool):
    # Inverted dropout with the on-chip PRNG: integer-domain threshold compare
    # + a single select fused with the 1/(1-p) scale (no u32->f32 convert).
    pltpu.prng_seed(seed_ref[0], pl.program_id(0))     # mix seed & tile id
    threshold = jnp.uint32(min(int(p * 4294967296.0), 4294967295))
    scale = jnp.float32(1.0 / (1.0 - p))
    pe_blk = pe_ref[...]                                           # f32 [tS, D]

    def _drop(y):
        bits = pltpu.bitcast(pltpu.prng_random_bits(y.shape), jnp.uint32)
        return jnp.where(bits >= threshold, y * scale, jnp.zeros_like(y))

    if sliced and batch > 1:
        for b in range(batch):
            sl = slice(b * d_model, (b + 1) * d_model)
            y = x_ref[:, sl].astype(jnp.float32) + pe_blk
            o_ref[:, sl] = _drop(y).astype(o_ref.dtype)
    else:
        pe_t = pe_blk if batch == 1 else jnp.concatenate([pe_blk] * batch, axis=-1)
        y = x_ref[...].astype(jnp.float32) + pe_t
        o_ref[...] = _drop(y).astype(o_ref.dtype)


# ----------------------------------------------------------------------------
# Wrapper.
# ----------------------------------------------------------------------------
def positional_encoding(x, pe_table, *, p: float = 0.1, train: bool = False,
                        seed: int = 0, tile_s: int | None = None):
    """x: [S, B, D]; pe_table: [max_len, D] (f32). Returns [S, B, D]."""
    S, B, D = x.shape
    itemsize = jnp.dtype(x.dtype).itemsize
    quantum = _sublane_quantum(x.dtype)
    row_bytes = B * D * itemsize

    pe = pe_table[:S, :].astype(jnp.float32)   # matches self.pe[:x.size(0)], kept f32
    x2 = x.reshape(S, B * D)                   # contiguous -> lane-dense 2-D view

    if tile_s is None:
        tS = _pick_tile_rows(S, row_bytes, quantum)
    else:
        tS = tile_s
        assert tS == S or (tS % quantum == 0 and tS <= S), (
            f"tile_s={tS} must be a multiple of {quantum} (dtype sublane quantum) "
            f"or equal to S={S}")
    grid = (pl.cdiv(S, tS),)                   # ragged last block is masked

    # Per-generation VMEM budget: v5e/v6e have 128 MiB (allow ~96), v7x 64 MiB
    # (cap at 48).  Never set the limit below the actual block footprint.
    try:
        vmem_cap = int(pltpu.get_tpu_info().vmem_capacity_bytes)
    except Exception:
        vmem_cap = 64 << 20                    # conservative (v7x-safe) fallback
    vmem_limit_cap = (96 << 20) if vmem_cap >= (100 << 20) else (48 << 20)

    block_bytes = tS * B * D * itemsize        # x block (out block is the same)
    pe_block_bytes = tS * D * 4                # pe block is f32
    footprint = 2 * (2 * block_bytes) + 2 * pe_block_bytes   # double-buffered
    vmem_limit = int(min(max(footprint + (4 << 20), 16 << 20), vmem_limit_cap))
    vmem_limit = int(max(vmem_limit, min(footprint + (2 << 20), vmem_cap - (8 << 20))))

    compiler_params = pltpu.CompilerParams(
        # Tiles are independent (dropout stream is a pure function of
        # seed + program_id) -> let v7x shard the grid across both TCs.
        dimension_semantics=("parallel",),
        vmem_limit_bytes=vmem_limit,
    )
    out_shape = jax.ShapeDtypeStruct((S, B * D), x.dtype)
    sliced = (D % 128 == 0)

    if train and p > 0.0:
        kernel = functools.partial(_add_pe_dropout_kernel,
                                   batch=B, d_model=D, p=p, sliced=sliced)
        seed_arr = jnp.array([seed], dtype=jnp.int32)
        y2 = pl.pallas_call(
            kernel,
            out_shape=out_shape,
            grid_spec=pltpu.PrefetchScalarGridSpec(
                num_scalar_prefetch=1,
                grid=grid,
                in_specs=[
                    pl.BlockSpec((tS, B * D), lambda i, _seed: (i, 0)),
                    pl.BlockSpec((tS, D), lambda i, _seed: (i, 0)),
                ],
                out_specs=pl.BlockSpec((tS, B * D), lambda i, _seed: (i, 0)),
            ),
            compiler_params=compiler_params,
        )(seed_arr, x2, pe)
    else:
        # Inference path: no scalar prefetch; alias x2 with the output to halve
        # peak HBM footprint for the activation (x2 is not reused afterwards).
        kernel = functools.partial(_add_pe_kernel,
                                   batch=B, d_model=D, sliced=sliced)
        y2 = pl.pallas_call(
            kernel,
            out_shape=out_shape,
            grid=grid,
            in_specs=[
                pl.BlockSpec((tS, B * D), lambda i: (i, 0)),
                pl.BlockSpec((tS, D), lambda i: (i, 0)),
            ],
            out_specs=pl.BlockSpec((tS, B * D), lambda i: (i, 0)),
            input_output_aliases={0: 0},
            compiler_params=compiler_params,
        )(x2, pe)

    return y2.reshape(S, B, D)


# ----------------------------------------------------------------------------
# Demo / self-test.
# ----------------------------------------------------------------------------
if __name__ == "__main__":
    # Small shapes consistent with the module: seq=8, batch=2, d_model=32.
    S, B, D = 8, 2, 32
    max_len = 64  # stand-in for max_len=5000 (only pe[:S] is ever used)

    key = jax.random.PRNGKey(0)
    x = jax.random.normal(key, (S, B, D), dtype=jnp.float32)

    pe_table = _make_pe(max_len, D)

    # Eval-mode forward (dropout = identity), matches the torch module in .eval().
    out = jax.block_until_ready(positional_encoding(x, pe_table, p=0.1, train=False))

    # Reference check in plain JAX.
    ref = x + pe_table[:S][:, None, :]
    assert out.shape == (S, B, D)
    assert jnp.allclose(out, ref, atol=1e-6), "mismatch vs reference"

    # Train-mode dropout uses the TPU hardware PRNG (TPU backend only).
    if jax.devices()[0].platform == "tpu":
        out_train = jax.block_until_ready(
            positional_encoding(x, pe_table, p=0.1, train=True, seed=123)
        )
        assert out_train.shape == (S, B, D)
        kept = float(jnp.mean((out_train != 0.0).astype(jnp.float32)))
        assert 0.5 < kept <= 1.0, f"unexpected dropout keep rate {kept}"

    print("KERNEL_OK")
</pallas_src>

<mosaic_0001>
module attributes {stable_mosaic.version = 11 : i64} {
  func.func @_add_pe_kernel(%arg0: i32, %arg1: memref<8x64xf32, #tpu.memory_space<vmem>>, %arg2: memref<8x32xf32, #tpu.memory_space<vmem>>, %arg3: memref<8x64xf32, #tpu.memory_space<vmem>>) attributes {dimension_semantics = [#tpu.dimension_semantics<parallel>], iteration_bounds = array<i64: 1>, scalar_prefetch = 0 : i64, scratch_operands = 0 : i64, tpu.core_type = #tpu.core_type<tc>, window_params = [{transform_indices = @transform_0, window_bounds = array<i64: 8, 64>}, {transform_indices = @transform_1, window_bounds = array<i64: 8, 32>}, {transform_indices = @transform_2, window_bounds = array<i64: 8, 64>}]} {
    %c0 = arith.constant 0 : index
    %c0_0 = arith.constant 0 : index
    %0 = vector.load %arg2[%c0, %c0_0] : memref<8x32xf32, #tpu.memory_space<vmem>>, vector<8x32xf32>
    %1 = tpu.concatenate %0, %0 in 1 : vector<8x32xf32>, vector<8x32xf32> -> vector<8x64xf32>
    %c0_1 = arith.constant 0 : index
    %c0_2 = arith.constant 0 : index
    %2 = vector.load %arg1[%c0_1, %c0_2] : memref<8x64xf32, #tpu.memory_space<vmem>>, vector<8x64xf32>
    %3 = arith.addf %2, %1 : vector<8x64xf32>
    %c0_3 = arith.constant 0 : index
    %c0_4 = arith.constant 0 : index
    %4 = vector.load %arg3[%c0_3, %c0_4] : memref<8x64xf32, #tpu.memory_space<vmem>>, vector<8x64xf32>
    tpu.vector_store %arg3[%c0_3, %c0_4], %3 {strides = array<i32>} : memref<8x64xf32, #tpu.memory_space<vmem>>, vector<8x64xf32>,
    return
  }
  func.func @transform_0(%arg0: i32) -> (i32, i32) {
    %c0_i32 = arith.constant 0 : i32
    %c0_i32_0 = arith.constant 0 : i32
    return %arg0, %c0_i32 : i32, i32
  }
  func.func @transform_1(%arg0: i32) -> (i32, i32) {
    %c0_i32 = arith.constant 0 : i32
    %c0_i32_0 = arith.constant 0 : i32
    return %arg0, %c0_i32 : i32, i32
  }
  func.func @transform_2(%arg0: i32) -> (i32, i32) {
    %c0_i32 = arith.constant 0 : i32
    %c0_i32_0 = arith.constant 0 : i32
    return %arg0, %c0_i32 : i32, i32
  }
}

</mosaic_0001>

<bundles_post_ra>
// kernel: tpu_custom_call.1
= control target key start
LH: loop header
LB: loop body
LE: loop exit
PB: predicated region body
PF: predicated region fallthrough
CT: control target
= control target key end

     0   :  { %7 = vsyncpa [#allocation3], 0  ;;  %s124_s0 = inlined_call_operand.hbm [shape: f32[8,64], index: 0, kind: input, shape index: {}, may-alias: {0,2}]   ;;  %s125_s1 = inlined_call_operand.vmem [shape: f32[8,32], index: 1, kind: input, shape index: {}]   ;;  %s126_s2 = inlined_call_operand.hbm [shape: f32[8,64], index: 2, kind: output, shape index: {}, may-alias: {0,2}]  }
   0x1   :  { %8 = vsyncpa [#allocation4], 0  ;;  %s97_s9 = smov [#allocation2]  }
   0x2   :  { %s15_s10 = sshll.u32 %s97_s9, 4  ;;  %s16_s10 = int_to_ptr.vmem [resolvable:$true] %s15_s10 }
   0x3   :  { %s61_s11 = scalar_lea.vmem %s16_s10, 128  ;;  %p66_p1 = scmp.lt.s32.totalorder %s16_s10, %s16_s10 }
   0x4   :  { %p62_p0 = scmp.ne.s32.totalorder %s16_s10, %s61_s11  ;;  %p67_p2 = scmp.lt.s32.totalorder %s61_s11, %s61_s11 }
   0x6   :  { %p68_p3 = por %p67_p2, %p66_p1 }
   0x8   :  { %p69_p4 = pnand %p68_p3, %p62_p0 }
   0xa   :  { %72 = shalt.err (!%p69_p4)
}
   0xb   :  { %18 = dma.hbm_to_vmem [thread:$0]  %s124_s0, 128, %s16_s10, [#allocation3]  }
   0xc   :  { %93 = dma.done.wait [#allocation3], 128  }
   0xd   :  { %94 = vsyncadd [#allocation3], 4294967168  ;;  %v24_v0 = vld [vmem:[%s125_s1] sm:$0xff]  ;;  %s98_s16 = smov 32   ;;  %vm29_vm0 = vcmask 261120   ;;  %s99_s17 = smov [#allocation5]  }
   0xe   :  { %26 = vrot.lane.b32.xlu0 %v24_v0, %s98_s16  ;;  %v31_v1 = vld [vmem:[#allocation2] sm:$0xff]  ;;  %s41_s18 = sshll.u32 %s99_s17, 4  ;;  %vm33_vm1 = vcmask 523264   ;;  %s42_s18 = int_to_ptr.vmem [resolvable:$true] %s41_s18 }
   0xf   :  { %s73_s19 = scalar_lea.vmem %s42_s18, 128  ;;  %p78_p6 = scmp.lt.s32.totalorder %s42_s18, %s42_s18 }
  0x10   :  { %p74_p5 = scmp.ne.s32.totalorder %s42_s18, %s73_s19  ;;  %p79_p7 = scmp.lt.s32.totalorder %s73_s19, %s73_s19 }
  0x12   :  { %p80_p8 = por %p79_p7, %p78_p6 }
  0x14   :  { %p81_p9 = pnand %p80_p8, %p74_p5 }
  0x80   :  { %v27_v2 = vpop.permute.xlu0 %26 }
  0x81   :  { %v30_v3 = vsel %vm29_vm0, %v24_v0, %v27_v2 }
  0x82   :  { %v32_v4 = vadd.f32 %v31_v1, %v30_v3 }
  0x84   :  { %34 = vst.msk [vmem:[#allocation5] sm:$0xff] %vm33_vm1, %v32_v4 }
  0x85   :  { %84 = shalt.err (!%p81_p9)
}
  0x86   :  { %44 = dma.vmem_to_hbm [thread:$0]  %s42_s18, 128, %s126_s2, [#allocation4]  }
  0x87   :  { %95 = dma.done.wait [#allocation4], 128  }
  0x88   :  { %96 = vsyncadd [#allocation4], 4294967168 }
  0x89   :  { %48 = vsyncpa [#allocation3], 1 }
  0x8a   :  { %49 = vsyncpa [#allocation4], 1 }

</bundles_post_ra>
